<compile_context>
chip_gen: v6e
topology: v6e:2x2x1
jax: 0.10.0
libtpu: 0.0.40
codegen_flags: <defaults>
</compile_context>

<pallas_src>
import jax
import jax.numpy as jnp
from jax.experimental import pallas as pl
from jax.experimental.pallas import tpu as pltpu


# ----------------------------- configuration --------------------------------
CONFIG = {
    "latent_dim_mf": 8,
    "latent_dim_mlp": 16,
    # layers[0] must equal 2 * latent_dim_mlp (as in the reference config)
    "layers": [32, 64, 32, 16],
}
NUM_USERS = 64
NUM_ITEMS = 128
BATCH = 8

# bf16 MXU operands (f32 accumulation) for v6e/v7x throughput.  Default off so
# the strict f32 parity check against the reference holds.
USE_BF16_MATMUL = False


def _round_up(x, m):
    return ((x + m - 1) // m) * m


# ------------------------------- Pallas kernel -------------------------------
def _make_neumf_kernel(L1, L2, L3, d_mf, use_bf16):
    """Builds the fused NeuMF kernel for static layer sizes.

    Kernel ref layout (batch on the lane axis, features on sublanes):
      uidx/iidx : (1, 1, TB) int32            user / item indices for this tile
      utab/itab : (L1 + d_mf, NUM_*) f32      fused gather tables:
                                              rows [0,L1)      = W0_half @ emb_mlp.T
                                              rows [L1,L1+dmf) = emb_mf.T
      w1, w2    : (L2, L1), (L3, L2) f32      remaining FC layers (PyTorch (out,in))
      vec       : (Rv, TB) f32                packed [b0|b1|b2|wa_h|wa_mf|ba],
                                              pre-broadcast over TB lanes
      out       : (1, 1, TB) f32              sigmoid ratings (lane-dense)
    """
    mm_dtype = jnp.bfloat16 if use_bf16 else jnp.float32

    def mm(a, b):
        # f32 accumulation always; operands stay f32 unless the bf16 flag is on.
        # (Mosaic's f32 x f32 matmul path is accurate well below the 1e-5
        #  parity tolerance at these dims; the precision-sensitive FC0
        #  precompute is pinned to HIGHEST on the host instead.)
        return jnp.dot(a.astype(mm_dtype), b.astype(mm_dtype),
                       preferred_element_type=jnp.float32)

    def kernel(uidx_ref, iidx_ref, utab_ref, itab_ref, w1_ref, w2_ref,
               vec_ref, out_ref):
        tb = out_ref.shape[-1]
        n_users = utab_ref.shape[-1]
        n_items = itab_ref.shape[-1]

        uidx = uidx_ref[0]                                   # (1, TB) int32
        iidx = iidx_ref[0]                                   # (1, TB) int32

        # Exact embedding/FC0 gather via one-hot matmuls on the MXU.  One-hot
        # entries are 0/1 so the selection is exact; tables are VMEM-resident.
        # TODO(synk): switch to scalar-prefetched indices + DMA row gather
        # (PrefetchScalarGridSpec / make_async_copy) once the tables outgrow a
        # few MiB — the whole-table-resident one-hot trick does not scale.
        u_oh = (jax.lax.broadcasted_iota(jnp.int32, (n_users, tb), 0) == uidx
                ).astype(jnp.float32)                        # (NU, TB)
        i_oh = (jax.lax.broadcasted_iota(jnp.int32, (n_items, tb), 0) == iidx
                ).astype(jnp.float32)                        # (NI, TB)
        u_feat = mm(utab_ref[...], u_oh)                     # (L1+d_mf, TB)
        i_feat = mm(itab_ref[...], i_oh)                     # (L1+d_mf, TB)

        # MF branch: element-wise product of the raw MF embedding rows.
        mf = u_feat[L1:, :] * i_feat[L1:, :]                 # (d_mf, TB)

        # Packed bias / head parameters (already broadcast over TB lanes).
        o1 = L1
        o2 = o1 + L2
        o3 = o2 + L3
        o4 = o3 + L3
        o5 = o4 + d_mf
        b0 = vec_ref[0:o1, :]                                # (L1, TB)
        b1 = vec_ref[o1:o2, :]                               # (L2, TB)
        b2 = vec_ref[o2:o3, :]                               # (L3, TB)
        wa_h = vec_ref[o3:o4, :]                             # (L3, TB)
        wa_mf = vec_ref[o4:o5, :]                            # (d_mf, TB)
        ba = vec_ref[o5:o5 + 1, :]                           # (1, TB)

        # fc_layers[0]: the gather already produced the pre-activation halves.
        h = jnp.maximum(u_feat[:L1, :] + i_feat[:L1, :] + b0, 0.0)   # (L1, TB)
        h = jnp.maximum(mm(w1_ref[...], h) + b1, 0.0)                # (L2, TB)
        h = jnp.maximum(mm(w2_ref[...], h) + b2, 0.0)                # (L3, TB)

        # N=1 affine head: VPU multiply + sublane reduce (no N=1 MXU matmul).
        logits = (jnp.sum(h * wa_h, axis=0, keepdims=True)
                  + jnp.sum(mf * wa_mf, axis=0, keepdims=True)
                  + ba)                                              # (1, TB)
        out_ref[0] = jax.nn.sigmoid(logits)

    return kernel


# ------------------------------- host wrapper --------------------------------
def _choose_tiling(batch, max_batch_tile=1024):
    """Pick (num_tiles, tile) with tile a multiple of 128, bounded padding,
    and >= 2 grid steps whenever batch > 128 (so v7x's 2 TCs both get work)."""
    b128 = _round_up(max(batch, 1), 128)
    if b128 <= 128:
        return 1, 128
    num_tiles = max(2, -(-b128 // max_batch_tile))
    tb = min(max_batch_tile, _round_up(-(-b128 // num_tiles), 128))
    num_tiles = -(-b128 // tb)
    return num_tiles, tb


def neumf_forward(user_indices, item_indices, kp, max_batch_tile=1024):
    """Pads/tiles the batch, runs the fused Pallas kernel, un-pads the result."""
    B = int(user_indices.shape[0])
    num_tiles, tb = _choose_tiling(B, max_batch_tile)
    bpad = num_tiles * tb
    pad = bpad - B

    u = jnp.pad(user_indices.astype(jnp.int32), (0, pad)).reshape(num_tiles, 1, tb)
    it = jnp.pad(item_indices.astype(jnp.int32), (0, pad)).reshape(num_tiles, 1, tb)

    # Pre-broadcast the packed bias/head vector to the tile's lane width so
    # every bias add in the kernel is a plain full-tile VPU add.
    vec = kp["vec"]
    vec_blob = jnp.broadcast_to(vec[:, None], (vec.shape[0], tb))

    L1 = kp["w1"].shape[1]
    L2 = kp["w1"].shape[0]
    L3 = kp["w2"].shape[0]
    d_mf = kp["user_tab"].shape[0] - L1
    kernel = _make_neumf_kernel(L1, L2, L3, d_mf, USE_BF16_MATMUL)

    batch_spec = pl.BlockSpec((1, 1, tb), lambda i: (i, 0, 0))

    def const_spec(arr):          # weights: fetched once, VMEM-resident
        nd = arr.ndim
        return pl.BlockSpec(arr.shape, lambda i, _nd=nd: (0,) * _nd)

    weights = (kp["user_tab"], kp["item_tab"], kp["w1"], kp["w2"], vec_blob)

    out = pl.pallas_call(
        kernel,
        out_shape=jax.ShapeDtypeStruct((num_tiles, 1, tb), jnp.float32),
        grid=(num_tiles,),
        in_specs=[batch_spec, batch_spec] + [const_spec(w) for w in weights],
        out_specs=batch_spec,
        compiler_params=pltpu.CompilerParams(
            dimension_semantics=("parallel",)),
    )(u, it, *weights)

    return out.reshape(bpad)[:B].reshape(B, 1)


# --------------------------- deterministic params ----------------------------
def init_params(key):
    """PyTorch-layout parameters: Linear.weight is (out, in), bias is (out,)."""
    d_mlp = CONFIG["latent_dim_mlp"]
    d_mf = CONFIG["latent_dim_mf"]
    layers = CONFIG["layers"]
    keys = jax.random.split(key, 12)
    p = {}
    # torch.nn.Embedding default init ~ N(0, 1)
    p["emb_user_mlp"] = jax.random.normal(keys[0], (NUM_USERS, d_mlp), jnp.float32)
    p["emb_item_mlp"] = jax.random.normal(keys[1], (NUM_ITEMS, d_mlp), jnp.float32)
    p["emb_user_mf"] = jax.random.normal(keys[2], (NUM_USERS, d_mf), jnp.float32)
    p["emb_item_mf"] = jax.random.normal(keys[3], (NUM_ITEMS, d_mf), jnp.float32)

    def linear(kw, kb, fan_in, fan_out):
        bound = 1.0 / jnp.sqrt(fan_in)
        w = jax.random.uniform(kw, (fan_out, fan_in), jnp.float32, -bound, bound)
        b = jax.random.uniform(kb, (fan_out,), jnp.float32, -bound, bound)
        return w, b

    p["w0"], p["b0"] = linear(keys[4], keys[5], layers[0], layers[1])
    p["w1"], p["b1"] = linear(keys[6], keys[7], layers[1], layers[2])
    p["w2"], p["b2"] = linear(keys[8], keys[9], layers[2], layers[3])
    p["wa"], p["ba"] = linear(keys[10], keys[11], layers[-1] + d_mf, 1)
    return p


def prepare_kernel_params(p):
    """One-time repack of PyTorch-layout params into the fused kernel layout."""
    P = jax.lax.Precision.HIGHEST
    d_mlp = CONFIG["latent_dim_mlp"]
    d_mf = CONFIG["latent_dim_mf"]
    L1, L2, L3 = CONFIG["layers"][1], CONFIG["layers"][2], CONFIG["layers"][3]
    # In-kernel row slices must stay sublane (8-row) aligned.
    assert L1 % 8 == 0 and L2 % 8 == 0 and L3 % 8 == 0 and d_mf % 8 == 0

    w0u = p["w0"][:, :d_mlp]                      # (L1, d_mlp)
    w0i = p["w0"][:, d_mlp:]                      # (L1, d_mlp)
    # Fold fc_layers[0] into the gather tables (HIGHEST precision precompute —
    # this runs under XLA, where DEFAULT precision would truncate to bf16):
    #   rows [0, L1)       : W0_half @ emb_mlp.T   (pre-activation, no bias)
    #   rows [L1, L1+d_mf) : emb_mf.T              (raw MF embedding)
    a_u = jnp.dot(w0u, p["emb_user_mlp"].T, precision=P)      # (L1, NUM_USERS)
    a_i = jnp.dot(w0i, p["emb_item_mlp"].T, precision=P)      # (L1, NUM_ITEMS)
    user_tab = jnp.concatenate([a_u, p["emb_user_mf"].T], axis=0)
    item_tab = jnp.concatenate([a_i, p["emb_item_mf"].T], axis=0)

    # Pack every small vector parameter into one sublane-aligned blob:
    # [b0 | b1 | b2 | wa_h | wa_mf | ba] (+ zero pad to a multiple of 8 rows).
    vec = jnp.concatenate([
        p["b0"], p["b1"], p["b2"],
        p["wa"][0, :L3], p["wa"][0, L3:], p["ba"],
    ], axis=0)
    rows = _round_up(int(vec.shape[0]), 8)
    vec = jnp.pad(vec, (0, rows - int(vec.shape[0])))

    kp = {
        "user_tab": user_tab,   # (L1 + d_mf, NUM_USERS)
        "item_tab": item_tab,   # (L1 + d_mf, NUM_ITEMS)
        "w1": p["w1"],          # (L2, L1)
        "w2": p["w2"],          # (L3, L2)
        "vec": vec,             # (Rv,)
    }
    return jax.tree_util.tree_map(lambda x: jnp.asarray(x, jnp.float32), kp)


# ------------------------------ reference (JAX) -------------------------------
def neumf_reference(user_indices, item_indices, params):
    P = jax.lax.Precision.HIGHEST
    user_mlp = params["emb_user_mlp"][user_indices]
    item_mlp = params["emb_item_mlp"][item_indices]
    user_mf = params["emb_user_mf"][user_indices]
    item_mf = params["emb_item_mf"][item_indices]
    h = jnp.concatenate([user_mlp, item_mlp], axis=-1)
    mf = user_mf * item_mf
    for w, b in ((params["w0"], params["b0"]),
                 (params["w1"], params["b1"]),
                 (params["w2"], params["b2"])):
        h = jnp.maximum(jnp.dot(h, w.T, precision=P) + b, 0.0)
    vector = jnp.concatenate([h, mf], axis=-1)
    logits = jnp.dot(vector, params["wa"].T, precision=P) + params["ba"]
    return jax.nn.sigmoid(logits)


# ----------------------------------- main -------------------------------------
if __name__ == "__main__":
    key = jax.random.PRNGKey(0)
    kparam_key, ku, ki = jax.random.split(key, 3)
    params = init_params(kparam_key)
    kernel_params = prepare_kernel_params(params)

    user_indices = jax.random.randint(ku, (BATCH,), 0, NUM_USERS, dtype=jnp.int32)
    item_indices = jax.random.randint(ki, (BATCH,), 0, NUM_ITEMS, dtype=jnp.int32)

    forward = jax.jit(neumf_forward)
    rating = forward(user_indices, item_indices, kernel_params)
    rating = jax.block_until_ready(rating)

    ref = neumf_reference(user_indices, item_indices, params)
    assert rating.shape == (BATCH, 1)
    assert jnp.allclose(rating, ref, atol=1e-5, rtol=1e-5), (rating, ref)
    print("KERNEL_OK")
</pallas_src>

<mosaic_0001>
module attributes {stable_mosaic.version = 11 : i64} {
  func.func @kernel(%arg0: i32, %arg1: memref<1x1x128xi32, #tpu.memory_space<vmem>>, %arg2: memref<1x1x128xi32, #tpu.memory_space<vmem>>, %arg3: memref<72x64xf32, #tpu.memory_space<vmem>>, %arg4: memref<72x128xf32, #tpu.memory_space<vmem>>, %arg5: memref<32x64xf32, #tpu.memory_space<vmem>>, %arg6: memref<16x32xf32, #tpu.memory_space<vmem>>, %arg7: memref<144x128xf32, #tpu.memory_space<vmem>>, %arg8: memref<1x1x128xf32, #tpu.memory_space<vmem>>) attributes {dimension_semantics = [#tpu.dimension_semantics<parallel>], iteration_bounds = array<i64: 1>, scalar_prefetch = 0 : i64, scratch_operands = 0 : i64, tpu.core_type = #tpu.core_type<tc>, window_params = [{transform_indices = @transform_0, window_bounds = array<i64: 1, 1, 128>}, {transform_indices = @transform_1, window_bounds = array<i64: 1, 1, 128>}, {pipeline_mode = #tpu.pipeline_mode<synchronous>, transform_indices = @transform_2, window_bounds = array<i64: 72, 64>}, {pipeline_mode = #tpu.pipeline_mode<synchronous>, transform_indices = @transform_3, window_bounds = array<i64: 72, 128>}, {pipeline_mode = #tpu.pipeline_mode<synchronous>, transform_indices = @transform_4, window_bounds = array<i64: 32, 64>}, {pipeline_mode = #tpu.pipeline_mode<synchronous>, transform_indices = @transform_5, window_bounds = array<i64: 16, 32>}, {pipeline_mode = #tpu.pipeline_mode<synchronous>, transform_indices = @transform_6, window_bounds = array<i64: 144, 128>}, {transform_indices = @transform_7, window_bounds = array<i64: 1, 1, 128>}]} {
    %c0 = arith.constant 0 : index
    %c0_0 = arith.constant 0 : index
    %c0_1 = arith.constant 0 : index
    %0 = vector.load %arg1[%c0, %c0_0, %c0_1] : memref<1x1x128xi32, #tpu.memory_space<vmem>>, vector<1x1x128xi32>
    %1 = vector.shape_cast %0 : vector<1x1x128xi32> to vector<1x128xi32>
    %c0_2 = arith.constant 0 : index
    %c0_3 = arith.constant 0 : index
    %c0_4 = arith.constant 0 : index
    %2 = vector.load %arg2[%c0_2, %c0_3, %c0_4] : memref<1x1x128xi32, #tpu.memory_space<vmem>>, vector<1x1x128xi32>
    %3 = vector.shape_cast %2 : vector<1x1x128xi32> to vector<1x128xi32>
    %4 = tpu.iota {dimensions = array<i32: 0>} : vector<64x128xi32>
    %5 = vector.broadcast %1 : vector<1x128xi32> to vector<64x128xi32>
    %6 = arith.cmpi eq, %4, %5 : vector<64x128xi32>
    %7 = arith.extui %6 : vector<64x128xi1> to vector<64x128xi32>
    %8 = arith.sitofp %7 : vector<64x128xi32> to vector<64x128xf32>
    %9 = tpu.iota {dimensions = array<i32: 0>} : vector<128x128xi32>
    %10 = vector.broadcast %3 : vector<1x128xi32> to vector<128x128xi32>
    %11 = arith.cmpi eq, %9, %10 : vector<128x128xi32>
    %12 = arith.extui %11 : vector<128x128xi1> to vector<128x128xi32>
    %13 = arith.sitofp %12 : vector<128x128xi32> to vector<128x128xf32>
    %c0_5 = arith.constant 0 : index
    %c0_6 = arith.constant 0 : index
    %14 = vector.load %arg3[%c0_5, %c0_6] : memref<72x64xf32, #tpu.memory_space<vmem>>, vector<72x64xf32>
    %cst = arith.constant dense<0.000000e+00> : vector<72x128xf32>
    %15 = tpu.matmul %14, %8, %cst {dimension_numbers = #tpu.dot_dimension_numbers<[1], [0], [0], [1], [0, 0, 1, 1], [], []>} : vector<72x64xf32>, vector<64x128xf32>, vector<72x128xf32> -> vector<72x128xf32>
    %c0_7 = arith.constant 0 : index
    %c0_8 = arith.constant 0 : index
    %16 = vector.load %arg4[%c0_7, %c0_8] : memref<72x128xf32, #tpu.memory_space<vmem>>, vector<72x128xf32>
    %cst_9 = arith.constant dense<0.000000e+00> : vector<72x128xf32>
    %17 = tpu.matmul %16, %13, %cst_9 {dimension_numbers = #tpu.dot_dimension_numbers<[1], [0], [0], [1], [0, 0, 1, 1], [], []>} : vector<72x128xf32>, vector<128x128xf32>, vector<72x128xf32> -> vector<72x128xf32>
    %18 = vector.extract_strided_slice %15 {offsets = [64, 0], sizes = [8, 128], strides = [1, 1]} : vector<72x128xf32> to vector<8x128xf32>
    %19 = vector.extract_strided_slice %17 {offsets = [64, 0], sizes = [8, 128], strides = [1, 1]} : vector<72x128xf32> to vector<8x128xf32>
    %20 = arith.mulf %18, %19 : vector<8x128xf32>
    %c0_10 = arith.constant 0 : index
    %c0_11 = arith.constant 0 : index
    %21 = vector.load %arg7[%c0_10, %c0_11] : memref<144x128xf32, #tpu.memory_space<vmem>>, vector<64x128xf32>
    %c64 = arith.constant 64 : index
    %c0_12 = arith.constant 0 : index
    %22 = vector.load %arg7[%c64, %c0_12] : memref<144x128xf32, #tpu.memory_space<vmem>>, vector<32x128xf32>
    %c96 = arith.constant 96 : index
    %c0_13 = arith.constant 0 : index
    %23 = vector.load %arg7[%c96, %c0_13] : memref<144x128xf32, #tpu.memory_space<vmem>>, vector<16x128xf32>
    %c112 = arith.constant 112 : index
    %c0_14 = arith.constant 0 : index
    %24 = vector.load %arg7[%c112, %c0_14] : memref<144x128xf32, #tpu.memory_space<vmem>>, vector<16x128xf32>
    %c128 = arith.constant 128 : index
    %c0_15 = arith.constant 0 : index
    %25 = vector.load %arg7[%c128, %c0_15] : memref<144x128xf32, #tpu.memory_space<vmem>>, vector<8x128xf32>
    %c136 = arith.constant 136 : index
    %c0_16 = arith.constant 0 : index
    %26 = vector.load %arg7[%c136, %c0_16] : memref<144x128xf32, #tpu.memory_space<vmem>>, vector<1x128xf32>
    %27 = vector.extract_strided_slice %15 {offsets = [0, 0], sizes = [64, 128], strides = [1, 1]} : vector<72x128xf32> to vector<64x128xf32>
    %28 = vector.extract_strided_slice %17 {offsets = [0, 0], sizes = [64, 128], strides = [1, 1]} : vector<72x128xf32> to vector<64x128xf32>
    %29 = arith.addf %27, %28 : vector<64x128xf32>
    %30 = arith.addf %29, %21 : vector<64x128xf32>
    %cst_17 = arith.constant 0.000000e+00 : f32
    %31 = vector.broadcast %cst_17 : f32 to vector<64x128xf32>
    %32 = arith.maximumf %30, %31 : vector<64x128xf32>
    %c0_18 = arith.constant 0 : index
    %c0_19 = arith.constant 0 : index
    %33 = vector.load %arg5[%c0_18, %c0_19] : memref<32x64xf32, #tpu.memory_space<vmem>>, vector<32x64xf32>
    %cst_20 = arith.constant dense<0.000000e+00> : vector<32x128xf32>
    %34 = tpu.matmul %33, %32, %cst_20 {dimension_numbers = #tpu.dot_dimension_numbers<[1], [0], [0], [1], [0, 0, 1, 1], [], []>} : vector<32x64xf32>, vector<64x128xf32>, vector<32x128xf32> -> vector<32x128xf32>
    %35 = arith.addf %34, %22 : vector<32x128xf32>
    %cst_21 = arith.constant 0.000000e+00 : f32
    %36 = vector.broadcast %cst_21 : f32 to vector<32x128xf32>
    %37 = arith.maximumf %35, %36 : vector<32x128xf32>
    %c0_22 = arith.constant 0 : index
    %c0_23 = arith.constant 0 : index
    %38 = vector.load %arg6[%c0_22, %c0_23] : memref<16x32xf32, #tpu.memory_space<vmem>>, vector<16x32xf32>
    %cst_24 = arith.constant dense<0.000000e+00> : vector<16x128xf32>
    %39 = tpu.matmul %38, %37, %cst_24 {dimension_numbers = #tpu.dot_dimension_numbers<[1], [0], [0], [1], [0, 0, 1, 1], [], []>} : vector<16x32xf32>, vector<32x128xf32>, vector<16x128xf32> -> vector<16x128xf32>
    %40 = arith.addf %39, %23 : vector<16x128xf32>
    %cst_25 = arith.constant 0.000000e+00 : f32
    %41 = vector.broadcast %cst_25 : f32 to vector<16x128xf32>
    %42 = arith.maximumf %40, %41 : vector<16x128xf32>
    %43 = arith.mulf %42, %24 : vector<16x128xf32>
    %cst_26 = arith.constant dense<0.000000e+00> : vector<128xf32>
    %44 = vector.multi_reduction <add>, %43, %cst_26 [0] : vector<16x128xf32> to vector<128xf32>
    %45 = vector.shape_cast %44 : vector<128xf32> to vector<1x128xf32>
    %46 = arith.mulf %20, %25 : vector<8x128xf32>
    %cst_27 = arith.constant dense<0.000000e+00> : vector<128xf32>
    %47 = vector.multi_reduction <add>, %46, %cst_27 [0] : vector<8x128xf32> to vector<128xf32>
    %48 = vector.shape_cast %47 : vector<128xf32> to vector<1x128xf32>
    %49 = arith.addf %45, %48 : vector<1x128xf32>
    %50 = arith.addf %49, %26 : vector<1x128xf32>
    %51 = arith.negf %50 : vector<1x128xf32>
    %52 = math.exp %51 : vector<1x128xf32>
    %cst_28 = arith.constant 1.000000e+00 : f32
    %53 = vector.broadcast %cst_28 : f32 to vector<1x128xf32>
    %54 = arith.addf %53, %52 : vector<1x128xf32>
    %55 = arith.divf %53, %54 : vector<1x128xf32>
    %c0_29 = arith.constant 0 : index
    %c0_30 = arith.constant 0 : index
    %c0_31 = arith.constant 0 : index
    %56 = vector.load %arg8[%c0_29, %c0_30, %c0_31] : memref<1x1x128xf32, #tpu.memory_space<vmem>>, vector<1x1x128xf32>
    %57 = vector.shape_cast %56 : vector<1x1x128xf32> to vector<1x128xf32>
    %58 = vector.shape_cast %55 : vector<1x128xf32> to vector<1x1x128xf32>
    tpu.vector_store %arg8[%c0_29, %c0_30, %c0_31], %58 {strides = array<i32>} : memref<1x1x128xf32, #tpu.memory_space<vmem>>, vector<1x1x128xf32>,
    return
  }
  func.func @transform_0(%arg0: i32) -> (i32, i32, i32) {
    %c0_i32 = arith.constant 0 : i32
    %c0_i32_0 = arith.constant 0 : i32
    %c0_i32_1 = arith.constant 0 : i32
    return %arg0, %c0_i32, %c0_i32_0 : i32, i32, i32
  }
  func.func @transform_1(%arg0: i32) -> (i32, i32, i32) {
    %c0_i32 = arith.constant 0 : i32
    %c0_i32_0 = arith.constant 0 : i32
    %c0_i32_1 = arith.constant 0 : i32
    return %arg0, %c0_i32, %c0_i32_0 : i32, i32, i32
  }
  func.func @transform_2(%arg0: i32) -> (i32, i32) {
    %c0_i32 = arith.constant 0 : i32
    %c0_i32_0 = arith.constant 0 : i32
    %c0_i32_1 = arith.constant 0 : i32
    return %c0_i32, %c0_i32_0 : i32, i32
  }
  func.func @transform_3(%arg0: i32) -> (i32, i32) {
    %c0_i32 = arith.constant 0 : i32
    %c0_i32_0 = arith.constant 0 : i32
    %c0_i32_1 = arith.constant 0 : i32
    return %c0_i32, %c0_i32_0 : i32, i32
  }
  func.func @transform_4(%arg0: i32) -> (i32, i32) {
    %c0_i32 = arith.constant 0 : i32
    %c0_i32_0 = arith.constant 0 : i32
    %c0_i32_1 = arith.constant 0 : i32
    return %c0_i32, %c0_i32_0 : i32, i32
  }
  func.func @transform_5(%arg0: i32) -> (i32, i32) {
    %c0_i32 = arith.constant 0 : i32
    %c0_i32_0 = arith.constant 0 : i32
    %c0_i32_1 = arith.constant 0 : i32
    return %c0_i32, %c0_i32_0 : i32, i32
  }
  func.func @transform_6(%arg0: i32) -> (i32, i32) {
    %c0_i32 = arith.constant 0 : i32
    %c0_i32_0 = arith.constant 0 : i32
    %c0_i32_1 = arith.constant 0 : i32
    return %c0_i32, %c0_i32_0 : i32, i32
  }
  func.func @transform_7(%arg0: i32) -> (i32, i32, i32) {
    %c0_i32 = arith.constant 0 : i32
    %c0_i32_0 = arith.constant 0 : i32
    %c0_i32_1 = arith.constant 0 : i32
    return %arg0, %c0_i32, %c0_i32_0 : i32, i32, i32
  }
}

</mosaic_0001>

<bundles_post_ra>
// kernel: neumf_forward.1
= control target key start
LH: loop header
LB: loop body
LE: loop exit
PB: predicated region body
PF: predicated region fallthrough
CT: control target
= control target key end

     0   :  { %v28_v0 = vlaneseq  ;;  %v922_v1 = vmov 0.0   ;;  %vm923_vm0 = vmmov 0   ;;  %v924_v10 = vmov 1.0   ;;  %s1262_s1 = inlined_call_operand.vmem [shape: s32[1,1,128], index: 1, kind: input, shape index: {}]   ;;  %s1263_s0 = inlined_call_operand.vmem [shape: s32[1,1,128], index: 0, kind: input, shape index: {}]   ;;  %s1264_s2 = inlined_call_operand.vmem [shape: f32[72,64], index: 2, kind: input, shape index: {}]   ;;  %s1265_s3 = inlined_call_operand.vmem [shape: f32[72,128], index: 3, kind: input, shape index: {}]   ;;  %s1266_s4 = inlined_call_operand.vmem [shape: f32[32,64], index: 4, kind: input, shape index: {}]   ;;  %s1267_s6 = inlined_call_operand.vmem [shape: f32[144,128], index: 6, kind: input, shape index: {}]   ;;  %s1268_s5 = inlined_call_operand.vmem [shape: f32[16,32], index: 5, kind: input, shape index: {}]   ;;  %s1269_s7 = inlined_call_operand.vmem [shape: f32[1,1,128], index: 7, kind: output, shape index: {}]  }
   0x1   :  { %823 = vmatprep.subr.mxu1 %v922_v1  ;;  %780 = vmatprep.subr.mxu0 %v922_v1  ;;  %v976_v3 = vld [vmem:[%s1262_s1] ss:$0 sm:$0xff]  ;;  %v126_v22 = vld [vmem:[%s1264_s2 + $0x8] sm:$0xff]  ;;  %v127_v23 = vld [vmem:[%s1264_s2 + $0x10] sm:$0xff] }
   0x2   :  { %v967_v2 = vshrl.u32 %v28_v0, 7  ;;  %796 = vmatprep.mubr.msk.f32.mxu0 %vm923_vm0, %v922_v1  ;;  %855 = vmatprep.mubr.msk.f32.mxu1 %vm923_vm0, %v922_v1  ;;  %v984_v7 = vld [vmem:[%s1263_s0] ss:$0 sm:$0xff]  ;;  %v128_v24 = vld [vmem:[%s1264_s2 + $0x18] sm:$0xff]  ;;  %v273_v27 = vld [vmem:[%s1265_s3 + $0x8] sm:$0xff] }
   0x3   :  { %v125_v21 = vld [vmem:[%s1264_s2] sm:$0xff]  ;;  %v130_v28 = vld [vmem:[%s1264_s2 + $0x28] sm:$0xff]  ;;  %v274_v29 = vld [vmem:[%s1265_s3 + $0x10] sm:$0xff] }
   0x4   :  { %v72_v4 = vadd.s32 120, %v967_v2  ;;  %v71_v5 = vadd.s32 112, %v967_v2  ;;  %v70_v6 = vadd.s32 104, %v967_v2  ;;  %v987_v8 = vadd.s32 56, %v967_v2  ;;  %v272_v25 = vld [vmem:[%s1265_s3] sm:$0xff]  ;;  %v131_v30 = vld [vmem:[%s1264_s2 + $0x30] sm:$0xff] }
   0x5   :  { %v69_v9 = vadd.s32 96, %v967_v2  ;;  %v68_v11 = vadd.s32 88, %v967_v2  ;;  %v35_v12 = vadd.s32 48, %v967_v2  ;;  %v1001_v13 = vadd.s32 40, %v967_v2  ;;  %v129_v26 = vld [vmem:[%s1264_s2 + $0x20] sm:$0xff]  ;;  %v275_v31 = vld [vmem:[%s1265_s3 + $0x18] sm:$0xff] }
   0x6   :  { %vm92_vm1 = vcmp.eq.s32.totalorder %v72_v4, %v976_v3  ;;  %vm91_vm2 = vcmp.eq.s32.totalorder %v71_v5, %v976_v3  ;;  %vm48_vm3 = vcmp.eq.s32.totalorder %v987_v8, %v984_v7  ;;  %vm90_vm4 = vcmp.eq.s32.totalorder %v70_v6, %v976_v3  ;;  %v132_v32 = vld [vmem:[%s1264_s2 + $0x38] sm:$0xff]  ;;  %v276_v33 = vld [vmem:[%s1265_s3 + $0x20] sm:$0xff]  ;;  %v277_v34 = vld [vmem:[%s1265_s3 + $0x28] sm:$0xff] }
   0x7   :  { %824 = vmatpush3.msk.msra.mxu1 %vm92_vm1, %v924_v10  ;;  %781 = vmatpush3.msk.msra.mxu0 %vm48_vm3, %v924_v10  ;;  %v67_v14 = vadd.s32 80, %v967_v2  ;;  %v1007_v15 = vadd.s32 32, %v967_v2  ;;  %vm89_vm5 = vcmp.eq.s32.totalorder %v69_v9, %v976_v3  ;;  %vm47_vm6 = vcmp.eq.s32.totalorder %v35_v12, %v984_v7  ;;  %v278_v35 = vld [vmem:[%s1265_s3 + $0x30] sm:$0xff]  ;;  %v279_v36 = vld [vmem:[%s1265_s3 + $0x38] sm:$0xff]  ;;  %v133_v37 = vld [vmem:[%s1264_s2 + $0x40] sm:$0xff] }
   0x8   :  { %825 = vmatprep.subr.mxu1 %v922_v1  ;;  %782 = vmatprep.subr.mxu0 %v922_v1  ;;  %vm46_vm7 = vcmp.eq.s32.totalorder %v1001_v13, %v984_v7  ;;  %v1015_v16 = vadd.s32 24, %v967_v2  ;;  %vm88_vm8 = vcmp.eq.s32.totalorder %v68_v11, %v976_v3  ;;  %v66_v17 = vadd.s32 72, %v967_v2  ;;  %v280_v38 = vld [vmem:[%s1265_s3 + $0x40] sm:$0xff]  ;;  %v399_v9 = vld [vmem:[%s1267_s6 + $0x38] sm:$0xff] }
   0x9   :  { %826 = vmatpush3.msk.msra.mxu1 %vm91_vm2, %v924_v10  ;;  %783 = vmatpush3.msk.msra.mxu0 %vm47_vm6, %v924_v10  ;;  %vm45_vm9 = vcmp.eq.s32.totalorder %v1007_v15, %v984_v7  ;;  %v31_v18 = vadd.s32 16, %v967_v2  ;;  %vm87_vm10 = vcmp.eq.s32.totalorder %v67_v14, %v976_v3  ;;  %v65_v19 = vadd.s32 64, %v967_v2  ;;  %v434_v39 = vld [vmem:[%s1266_s4] sm:$0xff] }
   0xa   :  { %827 = vmatprep.subr.mxu1 %v922_v1  ;;  %784 = vmatprep.subr.mxu0 %v922_v1  ;;  %vm44_vm11 = vcmp.eq.s32.totalorder %v1015_v16, %v984_v7  ;;  %v30_v20 = vadd.s32 8, %v967_v2  ;;  %vm86_vm12 = vcmp.eq.s32.totalorder %v66_v17, %v976_v3  ;;  %vm84_vm1 = vcmp.eq.s32.totalorder %v987_v8, %v976_v3  ;;  %v396_v17 = vld [vmem:[%s1267_s6 + $0x20] sm:$0xff] }
   0xb   :  { %828 = vmatpush3.msk.msra.mxu1 %vm90_vm4, %v924_v10  ;;  %785 = vmatpush3.msk.msra.mxu0 %vm46_vm7, %v924_v10  ;;  %vm43_vm13 = vcmp.eq.s32.totalorder %v31_v18, %v984_v7  ;;  %vm85_vm14 = vcmp.eq.s32.totalorder %v65_v19, %v976_v3  ;;  %vm41_vm2 = vcmp.eq.s32.totalorder %v967_v2, %v984_v7  ;;  %vm134_vm3 = vcmask 523264  }
   0xc   :  { %829 = vmatprep.subr.mxu1 %v922_v1  ;;  %786 = vmatprep.subr.mxu0 %v922_v1  ;;  %vm42_vm15 = vcmp.eq.s32.totalorder %v30_v20, %v984_v7  ;;  %vm83_vm4 = vcmp.eq.s32.totalorder %v35_v12, %v976_v3  ;;  %vm81_vm6 = vcmp.eq.s32.totalorder %v1007_v15, %v976_v3  ;;  %v398_v7 = vld [vmem:[%s1267_s6 + $0x30] sm:$0xff]  ;;  %v397_v12 = vld [vmem:[%s1267_s6 + $0x28] sm:$0xff] }
   0xd   :  { %830 = vmatpush3.msk.msra.mxu1 %vm89_vm5, %v924_v10  ;;  %787 = vmatpush3.msk.msra.mxu0 %vm45_vm9, %v924_v10  ;;  %vm82_vm5 = vcmp.eq.s32.totalorder %v1001_v13, %v976_v3  ;;  %vm80_vm7 = vcmp.eq.s32.totalorder %v1015_v16, %v976_v3  ;;  %vm78_vm9 = vcmp.eq.s32.totalorder %v30_v20, %v976_v3 }
   0xe   :  { %831 = vmatprep.subr.mxu1 %v922_v1  ;;  %788 = vmatprep.subr.mxu0 %v922_v1 }
   0xf   :  { %832 = vmatpush3.msk.msra.mxu1 %vm88_vm8, %v924_v10  ;;  %789 = vmatpush3.msk.msra.mxu0 %vm44_vm11, %v924_v10  ;;  %vm79_vm8 = vcmp.eq.s32.totalorder %v31_v18, %v976_v3 }
  0x10   :  { %833 = vmatprep.subr.mxu1 %v922_v1  ;;  %790 = vmatprep.subr.mxu0 %v922_v1 }
  0x11   :  { %834 = vmatpush3.msk.msra.mxu1 %vm87_vm10, %v924_v10  ;;  %791 = vmatpush3.msk.msra.mxu0 %vm43_vm13, %v924_v10  ;;  %vm77_vm10 = vcmp.eq.s32.totalorder %v967_v2, %v976_v3 }
  0x12   :  { %835 = vmatprep.subr.mxu1 %v922_v1  ;;  %792 = vmatprep.subr.mxu0 %v922_v1 }
  0x13   :  { %836 = vmatpush3.msk.msra.mxu1 %vm86_vm12, %v924_v10  ;;  %793 = vmatpush3.msk.msra.mxu0 %vm42_vm15, %v924_v10 }
  0x14   :  { %837 = vmatprep.subr.mxu1 %v922_v1  ;;  %794 = vmatprep.subr.mxu0 %v922_v1 }
  0x15   :  { %838 = vmatpush3.msk.msra.mxu1 %vm85_vm14, %v924_v10  ;;  %795 = vmatpush3.msk.msra.mxu0 %vm41_vm2, %v924_v10 }
  0x16   :  { %839 = vmatprep.subr.mxu1 %v922_v1  ;;  %797 = vmatmul.mubr.msk.f32.vlgmr.msra.gmra.mxu0 %vm134_vm3, %v125_v21  ;;  %v395_v21 = vld [vmem:[%s1267_s6 + $0x18] sm:$0xff] }
  0x17   :  { %840 = vmatpush3.msk.msra.mxu1 %vm84_vm1, %v924_v10  ;;  %799 = vmatprep.mubr.msk.f32.mxu0 %vm923_vm0, %v922_v1 }
  0x18   :  { %841 = vmatprep.subr.mxu1 %v922_v1 }
  0x19   :  { %842 = vmatpush3.msk.msra.mxu1 %vm83_vm4, %v924_v10 }
  0x1a   :  { %843 = vmatprep.subr.mxu1 %v922_v1  ;;  %800 = vmatmul.mubr.msk.f32.gmra.mxu0 %vm134_vm3, %v126_v22 }
  0x1b   :  { %844 = vmatpush3.msk.msra.mxu1 %vm82_vm5, %v924_v10  ;;  %802 = vmatprep.mubr.msk.f32.mxu0 %vm923_vm0, %v922_v1 }
  0x1c   :  { %845 = vmatprep.subr.mxu1 %v922_v1 }
  0x1d   :  { %846 = vmatpush3.msk.msra.mxu1 %vm81_vm6, %v924_v10 }
  0x1e   :  { %847 = vmatprep.subr.mxu1 %v922_v1  ;;  %803 = vmatmul.mubr.msk.f32.gmra.mxu0 %vm134_vm3, %v127_v23 }
  0x1f   :  { %848 = vmatpush3.msk.msra.mxu1 %vm80_vm7, %v924_v10  ;;  %805 = vmatprep.mubr.msk.f32.mxu0 %vm923_vm0, %v922_v1 }
  0x20   :  { %849 = vmatprep.subr.mxu1 %v922_v1 }
  0x21   :  { %850 = vmatpush3.msk.msra.mxu1 %vm79_vm8, %v924_v10 }
  0x22   :  { %851 = vmatprep.subr.mxu1 %v922_v1  ;;  %806 = vmatmul.mubr.msk.f32.gmra.mxu0 %vm134_vm3, %v128_v24 }
  0x23   :  { %852 = vmatpush3.msk.msra.mxu1 %vm78_vm9, %v924_v10  ;;  %808 = vmatprep.mubr.msk.f32.mxu0 %vm923_vm0, %v922_v1 }
  0x24   :  { %853 = vmatprep.subr.mxu1 %v922_v1 }
  0x25   :  { %854 = vmatpush3.msk.msra.mxu1 %vm77_vm10, %v924_v10 }
  0x26   :  { %856 = vmatmul.mubr.f32.vlgmr.msra.gmra.mxu1 %v272_v25  ;;  %809 = vmatmul.mubr.msk.f32.gmra.mxu0 %vm134_vm3, %v129_v26  ;;  %v394_v25 = vld [vmem:[%s1267_s6 + $0x10] sm:$0xff] }
  0x27   :  { %858 = vmatprep.mubr.msk.f32.mxu1 %vm923_vm0, %v922_v1  ;;  %811 = vmatprep.mubr.msk.f32.mxu0 %vm923_vm0, %v922_v1 }
  0x2a   :  { %859 = vmatmul.mubr.f32.gmra.mxu1 %v273_v27  ;;  %812 = vmatmul.mubr.msk.f32.gmra.mxu0 %vm134_vm3, %v130_v28 }
  0x2b   :  { %861 = vmatprep.mubr.msk.f32.mxu1 %vm923_vm0, %v922_v1  ;;  %814 = vmatprep.mubr.msk.f32.mxu0 %vm923_vm0, %v922_v1 }
  0x2e   :  { %862 = vmatmul.mubr.f32.gmra.mxu1 %v274_v29  ;;  %815 = vmatmul.mubr.msk.f32.gmra.mxu0 %vm134_vm3, %v131_v30  ;;  %v393_v29 = vld [vmem:[%s1267_s6 + $0x8] sm:$0xff] }
  0x2f   :  { %864 = vmatprep.mubr.msk.f32.mxu1 %vm923_vm0, %v922_v1  ;;  %817 = vmatprep.mubr.msk.f32.mxu0 %vm923_vm0, %v922_v1 }
  0x32   :  { %865 = vmatmul.mubr.f32.gmra.mxu1 %v275_v31  ;;  %818 = vmatmul.mubr.msk.f32.gmra.mxu0 %vm134_vm3, %v132_v32 }
  0x33   :  { %867 = vmatprep.mubr.msk.f32.mxu1 %vm923_vm0, %v922_v1  ;;  %820 = vmatprep.mubr.msk.f32.mxu0 %vm923_vm0, %v922_v1 }
  0x36   :  { %868 = vmatmul.mubr.f32.gmra.mxu1 %v276_v33  ;;  %821 = vmatmul.mubr.msk.f32.gmra.mxu0 %vm134_vm3, %v133_v37  ;;  %v392_v33 = vld [vmem:[%s1267_s6] sm:$0xff] }
  0x37   :  { %870 = vmatprep.mubr.msk.f32.mxu1 %vm923_vm0, %v922_v1  ;;  %898 = vmatprep.mubr.msk.f32.mxu0 %vm134_vm3, %v434_v39 }
  0x3a   :  { %871 = vmatmul.mubr.f32.gmra.mxu1 %v277_v34 }
  0x3b   :  { %873 = vmatprep.mubr.msk.f32.mxu1 %vm923_vm0, %v922_v1 }
  0x3e   :  { %874 = vmatmul.mubr.f32.gmra.mxu1 %v278_v35 }
  0x3f   :  { %876 = vmatprep.mubr.msk.f32.mxu1 %vm923_vm0, %v922_v1 }
  0x42   :  { %877 = vmatmul.mubr.f32.gmra.mxu1 %v279_v36 }
  0x43   :  { %879 = vmatprep.mubr.msk.f32.mxu1 %vm923_vm0, %v922_v1  ;;  %vm541_vm0 = vcmask 261120  }
  0x46   :  { %880 = vmatmul.mubr.f32.gmra.mxu1 %v280_v38 }
  0xd6   :  { %v228_v40 = vpop.f32.mrf.mxu0 }
  0xd8   :  { %v798_v41 = vpop.f32.mrf.mxu0 }
  0xd9   :  { %v436_v41 = vld [vmem:[%s1266_s4 + $0x10] sm:$0xff] }
  0xda   :  { %v233_v42 = vpop.f32.mrf.mxu0 }
  0xdc   :  { %v801_v43 = vpop.f32.mrf.mxu0 }
  0xde   :  { %v238_v44 = vpop.f32.mrf.mxu0 }
  0xe0   :  { %v804_v45 = vpop.f32.mrf.mxu0 }
  0xe2   :  { %v243_v46 = vpop.f32.mrf.mxu0 }
  0xe4   :  { %v807_v48 = vpop.f32.mrf.mxu0 }
  0xe5   :  { %v539_v48 = vld [vmem:[%s1268_s5] sm:$0xff] }
  0xe6   :  { %v347_v47 = vpop.f32.mrf.mxu1  ;;  %v248_v50 = vpop.f32.mrf.mxu0 }
  0xe7   :  { %v410_v30 = vadd.f32 %v347_v47, %v228_v40  ;;  %v435_v40 = vld [vmem:[%s1266_s4 + $0x8] sm:$0xff] }
  0xe8   :  { %v857_v49 = vpop.f32.mrf.mxu1  ;;  %v810_v52 = vpop.f32.mrf.mxu0 }
  0xe9   :  { %v418_v36 = vadd.f32 %v410_v30, %v392_v33  ;;  %v401_v52 = vld [vmem:[%s1267_s6 + $0x48] sm:$0xff] }
  0xea   :  { %v352_v51 = vpop.f32.mrf.mxu1  ;;  %v253_v54 = vpop.f32.mrf.mxu0 }
  0xeb   :  { %v411_v26 = vadd.f32 %v352_v51, %v233_v42  ;;  %v426_v39 = vmax.f32 %v418_v36, 0.0  ;;  %v437_v42 = vld [vmem:[%s1266_s4 + $0x18] sm:$0xff] }
  0xec   :  { %v860_v53 = vpop.f32.mrf.mxu1  ;;  %v813_v56 = vpop.f32.mrf.mxu0  ;;  %v403_v51 = vld [vmem:[%s1267_s6 + $0x58] sm:$0xff] }
  0xed   :  { %v419_v34 = vadd.f32 %v411_v26, %v393_v29  ;;  %v400_v56 = vld [vmem:[%s1267_s6 + $0x40] sm:$0xff]  ;;  %v409_v29 = vld [vmem:[%s1267_s6 + $0x88] sm:$0x1] }
  0xee   :  { %v357_v55 = vpop.f32.mrf.mxu1  ;;  %v258_v58 = vpop.f32.mrf.mxu0 }
  0xef   :  { %v412_v22 = vadd.f32 %v357_v55, %v238_v44  ;;  %v427_v38 = vmax.f32 %v419_v34, 0.0 }
  0xf0   :  { %v863_v57 = vpop.f32.mrf.mxu1  ;;  %v816_v60 = vpop.f32.mrf.mxu0 }
  0xf1   :  { %v420_v31 = vadd.f32 %v412_v22, %v394_v25 }
  0xf2   :  { %v362_v59 = vpop.f32.mrf.mxu1  ;;  %v263_v62 = vpop.f32.mrf.mxu0 }
  0xf3   :  { %v413_v18 = vadd.f32 %v362_v59, %v243_v46  ;;  %v428_v37 = vmax.f32 %v420_v31, 0.0 }
  0xf4   :  { %v866_v61 = vpop.f32.mrf.mxu1  ;;  %v819_v0 = vpop.f32.mrf.mxu0 }
  0xf5   :  { %v421_v27 = vadd.f32 %v413_v18, %v395_v21 }
  0xf6   :  { %v367_v63 = vpop.f32.mrf.mxu1  ;;  %v268_v43 = vpop.f32.mrf.mxu0 }
  0xf7   :  { %v414_v14 = vadd.f32 %v367_v63, %v248_v50  ;;  %v429_v35 = vmax.f32 %v421_v27, 0.0 }
  0xf8   :  { %v869_v1 = vpop.f32.mrf.mxu1  ;;  %v822_v46 = vpop.f32.mrf.mxu0 }
  0xf9   :  { %v422_v23 = vadd.f32 %v414_v14, %v396_v17  ;;  %v540_v1 = vld [vmem:[%s1268_s5 + $0x8] sm:$0xff] }
  0xfa   :  { %v372_v2 = vpop.f32.mrf.mxu1 }
  0xfb   :  { %v415_v10 = vadd.f32 %v372_v2, %v253_v54  ;;  %v430_v32 = vmax.f32 %v422_v23, 0.0  ;;  %v402_v54 = vld [vmem:[%s1267_s6 + $0x50] sm:$0xff]  ;;  %v408_v2 = vld [vmem:[%s1267_s6 + $0x80] sm:$0xff] }
  0xfc   :  { %v872_v3 = vpop.f32.mrf.mxu1 }
  0xfd   :  { %v423_v19 = vadd.f32 %v415_v10, %v397_v12  ;;  %v407_v12 = vld [vmem:[%s1267_s6 + $0x78] sm:$0xff] }
  0xfe   :  { %v377_v4 = vpop.f32.mrf.mxu1 }
  0xff   :  { %v416_v6 = vadd.f32 %v377_v4, %v258_v58  ;;  %v431_v28 = vmax.f32 %v423_v19, 0.0  ;;  %v405_v4 = vld [vmem:[%s1267_s6 + $0x68] sm:$0xff] }
 0x100   :  { %v875_v5 = vpop.f32.mrf.mxu1 }
 0x101   :  { %v424_v15 = vadd.f32 %v416_v6, %v398_v7  ;;  %v404_v6 = vld [vmem:[%s1267_s6 + $0x60] sm:$0xff] }
 0x102   :  { %v382_v8 = vpop.f32.mrf.mxu1 }
 0x103   :  { %v417_v11 = vadd.f32 %v382_v8, %v263_v62  ;;  %v432_v24 = vmax.f32 %v424_v15, 0.0 }
 0x104   :  { %v878_v13 = vpop.f32.mrf.mxu1 }
 0x105   :  { %v425_v16 = vadd.f32 %v417_v11, %v399_v9  ;;  %v406_v13 = vld [vmem:[%s1267_s6 + $0x70] sm:$0xff] }
 0x106   :  { %v387_v44 = vpop.f32.mrf.mxu1 }
 0x107   :  { %v433_v20 = vmax.f32 %v425_v16, 0.0  ;;  %v391_v45 = vmul.f32 %v387_v44, %v268_v43 }
 0x108   :  { %v881_v47 = vpop.f32.mrf.mxu1 }
 0x109   :  { %882 = vmatprep.subr.mxu0 %v433_v20  ;;  %v634_v3 = vmul.f32 %v408_v2, %v391_v45 }
 0x10a   :  { %883 = vmatpush3.msra.mxu0 %v433_v20 }
 0x10b   :  { %884 = vmatprep.subr.mxu0 %v432_v24  ;;  %v635_v7 = vrot.slane %v634_v3, 4 }
 0x10c   :  { %885 = vmatpush3.msra.mxu0 %v432_v24 }
 0x10d   :  { %886 = vmatprep.subr.mxu0 %v431_v28  ;;  %v636_v14 = vadd.f32 %v635_v7, %v634_v3 }
 0x10e   :  { %887 = vmatpush3.msra.mxu0 %v431_v28 }
 0x10f   :  { %888 = vmatprep.subr.mxu0 %v430_v32  ;;  %v637_v18 = vrot.slane %v636_v14, 2 }
 0x110   :  { %889 = vmatpush3.msra.mxu0 %v430_v32 }
 0x111   :  { %890 = vmatprep.subr.mxu0 %v429_v35  ;;  %v638_v21 = vadd.f32 %v637_v18, %v636_v14 }
 0x112   :  { %891 = vmatpush3.msra.mxu0 %v429_v35 }
 0x113   :  { %892 = vmatprep.subr.mxu0 %v428_v37  ;;  %v639_v24 = vrot.slane %v638_v21, 1 }
 0x114   :  { %893 = vmatpush3.msra.mxu0 %v428_v37 }
 0x115   :  { %894 = vmatprep.subr.mxu0 %v427_v38  ;;  %v640_v27 = vadd.f32 %v639_v24, %v638_v21 }
 0x116   :  { %895 = vmatpush3.msra.mxu0 %v427_v38 }
 0x117   :  { %896 = vmatprep.subr.mxu0 %v426_v39 }
 0x118   :  { %897 = vmatpush3.msra.mxu0 %v426_v39 }
 0x119   :  { %899 = vmatmul.mubr.msk.f32.vlgmr.msra.gmra.mxu0 %vm134_vm3, %v435_v40 }
 0x11a   :  { %901 = vmatprep.mubr.msk.f32.mxu0 %vm134_vm3, %v436_v41 }
 0x11d   :  { %902 = vmatmul.mubr.msk.f32.gmra.mxu0 %vm134_vm3, %v437_v42 }
 0x11e   :  { %912 = vmatprep.mubr.msk.f32.mxu0 %vm541_vm0, %v539_v48 }
 0x1d9   :  { %v900_v49 = vpop.f32.mrf.mxu0 }
 0x1da   :  { %v522_v58 = vadd.f32 %v900_v49, %v401_v52 }
 0x1db   :  { %v516_v50 = vpop.f32.mrf.mxu0 }
 0x1dc   :  { %v517_v61 = vadd.f32 %v516_v50, %v400_v56  ;;  %v536_v63 = vmax.f32 %v522_v58, 0.0 }
 0x1dd   :  { %v903_v53 = vpop.f32.mrf.mxu0 }
 0x1de   :  { %v532_v55 = vadd.f32 %v903_v53, %v403_v51  ;;  %v535_v0 = vmax.f32 %v517_v61, 0.0 }
 0x1df   :  { %v526_v57 = vpop.f32.mrf.mxu0 }
 0x1e0   :  { %v538_v59 = vmax.f32 %v532_v55, 0.0  ;;  %v527_v60 = vadd.f32 %v526_v57, %v402_v54 }
 0x1e2   :  { %v537_v62 = vmax.f32 %v527_v60, 0.0  ;;  %904 = vmatprep.subr.mxu0 %v538_v59 }
 0x1e3   :  { %905 = vmatpush3.msra.mxu0 %v538_v59 }
 0x1e4   :  { %906 = vmatprep.subr.mxu0 %v537_v62 }
 0x1e5   :  { %907 = vmatpush3.msra.mxu0 %v537_v62 }
 0x1e6   :  { %908 = vmatprep.subr.mxu0 %v536_v63 }
 0x1e7   :  { %909 = vmatpush3.msra.mxu0 %v536_v63 }
 0x1e8   :  { %910 = vmatprep.subr.mxu0 %v535_v0 }
 0x1e9   :  { %911 = vmatpush3.msra.mxu0 %v535_v0 }
 0x1ea   :  { %913 = vmatmul.mubr.msk.f32.vlgmr.msra.gmra.mxu0 %vm541_vm0, %v540_v1 }
 0x2aa   :  { %v914_v5 = vpop.f32.mrf.mxu0 }
 0x2ab   :  { %v620_v8 = vadd.f32 %v914_v5, %v405_v4 }
 0x2ac   :  { %v614_v9 = vpop.f32.mrf.mxu0 }
 0x2ad   :  { %v624_v10 = vmax.f32 %v620_v8, 0.0  ;;  %v615_v11 = vadd.f32 %v614_v9, %v404_v6 }
 0x2af   :  { %v623_v15 = vmax.f32 %v615_v11, 0.0  ;;  %v626_v16 = vmul.f32 %v624_v10, %v407_v12 }
 0x2b1   :  { %v625_v17 = vmul.f32 %v623_v15, %v406_v13 }
 0x2b3   :  { %v627_v19 = vadd.f32 %v626_v16, %v625_v17 }
 0x2b5   :  { %v628_v20 = vrot.slane %v627_v19, 4 }
 0x2b7   :  { %v629_v22 = vadd.f32 %v628_v20, %v627_v19 }
 0x2b9   :  { %v630_v23 = vrot.slane %v629_v22, 2 }
 0x2bb   :  { %v631_v25 = vadd.f32 %v630_v23, %v629_v22 }
 0x2bd   :  { %v632_v26 = vrot.slane %v631_v25, 1 }
 0x2bf   :  { %v633_v28 = vadd.f32 %v632_v26, %v631_v25 }
 0x2c1   :  { %v641_v30 = vadd.f32 %v640_v27, %v633_v28 }
 0x2c3   :  { %v642_v31 = vadd.f32 %v641_v30, %v409_v29 }
 0x2c5   :  { %v719_v32 = vmul.f32 -1.442695, %v642_v31 }
 0x2c7   :  { %918 = vpow2.f32 %v719_v32 }
 0x2d4   :  { %v919_v33 = vpop.eup %918 }
 0x2d5   :  { %v646_v34 = vadd.f32 1.0, %v919_v33 }
 0x2d7   :  { %920 = vrcp.f32 %v646_v34 }
 0x2e4   :  { %v921_v35 = vpop.eup %920 }
 0x2e5   :  { %649 = vst [vmem:[%s1269_s7] sm:$0x1] %v921_v35 }

</bundles_post_ra>
